<compile_context>
chip_gen: v5e
topology: v5e:2x2
jax: 0.10.0
libtpu: 0.0.40
codegen_flags: <defaults>
</compile_context>

<pallas_src>
import math

import jax
import jax.numpy as jnp
from jax.experimental import pallas as pl
from jax.experimental.pallas import tpu as pltpu


def _round_up(n, m):
    return (n + m - 1) // m * m


def _cdiv(a, b):
    return (a + b - 1) // b


# --------------------------------------------------------------------------
# Kernel: fused 6-layer chain   x(TB,D) @ W[i](D,D) + b[i](1,D)
#   layers 0,1   : block-diag embedding hidden layers (relu)
#   layer  2     : embedding last layers (identity)  -> z = [z_obs | z_act]
#   layers 3,4   : decoder hidden layers (relu)
#   layer  5     : decoder last layer + tanh
# --------------------------------------------------------------------------
def embedding_ae_kernel(x_ref, w_ref, b_ref, o_ref):
    def dense(h, i):
        return jnp.dot(h, w_ref[i], preferred_element_type=jnp.float32) + b_ref[i]

    h = x_ref[...]
    h = jnp.maximum(dense(h, 0), 0.0)
    h = jnp.maximum(dense(h, 1), 0.0)
    h = dense(h, 2)                      # identity output activation -> z
    h = jnp.maximum(dense(h, 3), 0.0)
    h = jnp.maximum(dense(h, 4), 0.0)
    o_ref[...] = jnp.tanh(dense(h, 5)).astype(o_ref.dtype)


def _choose_batch_tile(B, target=1024):
    """Pick (TB, Bp, steps) for the batch grid axis.

    Small B  -> one grid step (no per-step overhead at all).
    Large B  -> ~`target`-row tiles with an EVEN number of >=2 steps so the
                "parallel" axis shards evenly across v7x's two TensorCores
                (no effect on single-TC v5e/v6e)."""
    B8 = _round_up(max(B, 8), 8)
    if B8 <= target:
        return B8, B8, 1
    steps = _cdiv(B8, target)
    steps += steps % 2                      # round step count up to even
    TB = _round_up(_cdiv(B8, steps), 8)
    Bp = steps * TB
    return TB, Bp, steps


def embedding_ae_forward(obs, act, packed, *, batch_tile_target=1024):
    """Fused Emdedding_AE forward. Returns (B, act_sz)."""
    w_stack, b_stack, (obs_sz, act_sz, D) = packed
    L = w_stack.shape[0]
    B = obs.shape[0]

    TB, Bp, steps = _choose_batch_tile(B, batch_tile_target)

    # Single fused concat + pad (one pass over the input slab in HBM).
    x = jnp.concatenate([obs.astype(jnp.float32), act.astype(jnp.float32)], axis=-1)
    x = jnp.pad(x, ((0, Bp - B), (0, D - (obs_sz + act_sz))))

    # VMEM budget: double-buffered activation in/out tiles + single-buffered
    # parameter stacks, with generous headroom, capped well under v7x's 64 MiB.
    vmem_need = 4 * (2 * 2 * TB * D + L * D * D + L * D)
    vmem_limit = min(max(4 * vmem_need, 4 << 20), 32 << 20)

    out = pl.pallas_call(
        embedding_ae_kernel,
        out_shape=jax.ShapeDtypeStruct((Bp, D), jnp.float32),
        grid_spec=pltpu.PrefetchScalarGridSpec(
            num_scalar_prefetch=0,
            grid=(steps,),
            in_specs=[
                # Activations: tiled along the batch, double-buffered pipeline.
                pl.BlockSpec((TB, D), lambda i: (i, 0)),
                # Parameters: constant index_map -> VMEM-resident; single
                # buffer since the block never changes across grid steps.
                pl.BlockSpec((L, D, D), lambda i: (0, 0, 0),
                             pipeline_mode=pl.Buffered(1)),
                pl.BlockSpec((L, 1, D), lambda i: (0, 0, 0),
                             pipeline_mode=pl.Buffered(1)),
            ],
            out_specs=pl.BlockSpec((TB, D), lambda i: (i, 0)),
        ),
        compiler_params=pltpu.CompilerParams(
            dimension_semantics=("parallel",),
            vmem_limit_bytes=vmem_limit,
        ),
    )(x, w_stack, b_stack)

    return out[:B, :act_sz]


# --------------------------------------------------------------------------
# Parameter init mirroring the PyTorch module (weights stored as (in, out))
# --------------------------------------------------------------------------
def _uniform(key, shape, lo, hi):
    return jax.random.uniform(key, shape, jnp.float32, lo, hi)


def _init_mlp(key, in_size, hidden_sizes, out_size, init_w=0.003, b_init_value=0.1):
    """Mlp init: fanin_init hidden weights, bias=0.1; last_fc uniform(+/-init_w)."""
    h0, h1 = hidden_sizes
    ks = jax.random.split(key, 4)
    bnd = 1.0 / math.sqrt(in_size)
    w0 = _uniform(ks[0], (in_size, h0), -bnd, bnd)
    b0 = jnp.full((h0,), b_init_value, jnp.float32)
    bnd = 1.0 / math.sqrt(h0)
    w1 = _uniform(ks[1], (h0, h1), -bnd, bnd)
    b1 = jnp.full((h1,), b_init_value, jnp.float32)
    wl = _uniform(ks[2], (h1, out_size), -init_w, init_w)
    bl = _uniform(ks[3], (out_size,), -init_w, init_w)
    return (w0, b0, w1, b1, wl, bl)


def init_raw_params(key, input_sizes, embedding_sizes, hidden_sizes):
    obs_sz, act_sz = input_sizes
    e0, e1 = embedding_sizes
    k_obs, k_act, k_dec = jax.random.split(key, 3)
    return {
        "obs": _init_mlp(k_obs, obs_sz, hidden_sizes, e0),
        "act": _init_mlp(k_act, act_sz, hidden_sizes, e1),
        "dec": _init_mlp(k_dec, e0 + e1, hidden_sizes, act_sz),
    }


def pack_params(raw, input_sizes, embedding_sizes, hidden_sizes):
    """Pack the 3 MLPs into one (6,D,D) weight stack + (6,1,D) bias stack.

    Layers 0-2 hold the two embedding MLPs as block-diagonal layers acting on
    x = [obs | act]; their last layer emits z = [z_obs | z_act] directly, so
    no concat is needed anywhere. Layers 3-5 are the decoder. D is padded to
    a multiple of 128 so every layer is lane-dense (full vregs, full 128x128
    MXU tiles, unmasked stores); zero padding keeps padded lanes exactly zero
    through the whole chain."""
    obs_sz, act_sz = input_sizes
    e0, e1 = embedding_sizes
    h0, h1 = hidden_sizes
    D = _round_up(max(obs_sz + act_sz, 2 * h0, 2 * h1, e0 + e1, act_sz), 128)
    L = 6
    W = jnp.zeros((L, D, D), jnp.float32)
    b = jnp.zeros((L, 1, D), jnp.float32)

    ow0, ob0, ow1, ob1, owl, obl = raw["obs"]
    aw0, ab0, aw1, ab1, awl, abl = raw["act"]
    dw0, db0, dw1, db1, dwl, dbl = raw["dec"]

    # layer 0: [obs|act] -> [h_obs(h0) | h_act(h0)]
    W = W.at[0, :obs_sz, :h0].set(ow0)
    W = W.at[0, obs_sz:obs_sz + act_sz, h0:2 * h0].set(aw0)
    b = b.at[0, 0, :h0].set(ob0)
    b = b.at[0, 0, h0:2 * h0].set(ab0)
    # layer 1: block-diag hidden
    W = W.at[1, :h0, :h1].set(ow1)
    W = W.at[1, h0:2 * h0, h1:2 * h1].set(aw1)
    b = b.at[1, 0, :h1].set(ob1)
    b = b.at[1, 0, h1:2 * h1].set(ab1)
    # layer 2: embedding last layers -> z = [z_obs(e0) | z_act(e1)]
    W = W.at[2, :h1, :e0].set(owl)
    W = W.at[2, h1:2 * h1, e0:e0 + e1].set(awl)
    b = b.at[2, 0, :e0].set(obl)
    b = b.at[2, 0, e0:e0 + e1].set(abl)
    # layer 3: decoder fc0
    W = W.at[3, :e0 + e1, :h0].set(dw0)
    b = b.at[3, 0, :h0].set(db0)
    # layer 4: decoder fc1
    W = W.at[4, :h0, :h1].set(dw1)
    b = b.at[4, 0, :h1].set(db1)
    # layer 5: decoder last fc (tanh applied in kernel)
    W = W.at[5, :h1, :act_sz].set(dwl)
    b = b.at[5, 0, :act_sz].set(dbl)

    return W, b, (obs_sz, act_sz, D)


# --------------------------------------------------------------------------
# Pure-JAX reference built from the RAW (unpacked) params
# --------------------------------------------------------------------------
def reference_forward(obs, act, raw):
    def mlp(x, p):
        w0, b0, w1, b1, wl, bl = p
        h = jax.nn.relu(x @ w0 + b0)
        h = jax.nn.relu(h @ w1 + b1)
        return h @ wl + bl

    z_obs = mlp(obs, raw["obs"])
    z_act = mlp(act, raw["act"])
    z = jnp.concatenate([z_obs, z_act], axis=-1)
    return jnp.tanh(mlp(z, raw["dec"]))


if __name__ == "__main__":
    # Module-consistent small shapes.
    input_sizes = (16, 8)        # (obs_sz, act_sz)
    embedding_sizes = (16, 16)
    hidden_sizes = (32, 32)

    key = jax.random.PRNGKey(0)
    k_obs, k_act, k_params, k_obs2, k_act2, k_obs3, k_act3 = jax.random.split(key, 7)

    raw = init_raw_params(k_params, input_sizes, embedding_sizes, hidden_sizes)
    packed = pack_params(raw, input_sizes, embedding_sizes, hidden_sizes)

    # Main run: small batch -> single grid step (no per-step overhead).
    B = 64
    obs = jax.random.normal(k_obs, (B, input_sizes[0]), jnp.float32)
    act = jax.random.normal(k_act, (B, input_sizes[1]), jnp.float32)
    out = jax.block_until_ready(embedding_ae_forward(obs, act, packed))
    ref = reference_forward(obs, act, raw)
    assert out.shape == (B, input_sizes[1])
    assert jnp.allclose(out, ref, atol=1e-5, rtol=1e-5)

    # Ragged-batch run (exercises wrapper-side batch padding).
    B2 = 5
    obs2 = jax.random.normal(k_obs2, (B2, input_sizes[0]), jnp.float32)
    act2 = jax.random.normal(k_act2, (B2, input_sizes[1]), jnp.float32)
    out2 = jax.block_until_ready(embedding_ae_forward(obs2, act2, packed))
    ref2 = reference_forward(obs2, act2, raw)
    assert out2.shape == (B2, input_sizes[1])
    assert jnp.allclose(out2, ref2, atol=1e-5, rtol=1e-5)

    # Larger-batch run (exercises the even multi-step "parallel" grid path).
    B3 = 1500
    obs3 = jax.random.normal(k_obs3, (B3, input_sizes[0]), jnp.float32)
    act3 = jax.random.normal(k_act3, (B3, input_sizes[1]), jnp.float32)
    out3 = jax.block_until_ready(embedding_ae_forward(obs3, act3, packed))
    ref3 = reference_forward(obs3, act3, raw)
    assert out3.shape == (B3, input_sizes[1])
    assert jnp.allclose(out3, ref3, atol=1e-5, rtol=1e-5)

    print("KERNEL_OK")
</pallas_src>

<mosaic_0001>
module attributes {stable_mosaic.version = 11 : i64} {
  func.func @embedding_ae_kernel(%arg0: i32, %arg1: memref<64x128xf32, #tpu.memory_space<vmem>>, %arg2: memref<6x128x128xf32, #tpu.memory_space<vmem>>, %arg3: memref<6x1x128xf32, #tpu.memory_space<vmem>>, %arg4: memref<64x128xf32, #tpu.memory_space<vmem>>) attributes {dimension_semantics = [#tpu.dimension_semantics<parallel>], iteration_bounds = array<i64: 1>, scalar_prefetch = 0 : i64, scratch_operands = 0 : i64, tpu.core_type = #tpu.core_type<tc>, window_params = [{transform_indices = @transform_0, window_bounds = array<i64: 64, 128>}, {pipeline_mode = #tpu.pipeline_mode<synchronous>, transform_indices = @transform_1, window_bounds = array<i64: 6, 128, 128>}, {pipeline_mode = #tpu.pipeline_mode<synchronous>, transform_indices = @transform_2, window_bounds = array<i64: 6, 1, 128>}, {transform_indices = @transform_3, window_bounds = array<i64: 64, 128>}]} {
    %c0 = arith.constant 0 : index
    %c0_0 = arith.constant 0 : index
    %0 = vector.load %arg1[%c0, %c0_0] : memref<64x128xf32, #tpu.memory_space<vmem>>, vector<64x128xf32>
    %c0_1 = arith.constant 0 : index
    %c0_2 = arith.constant 0 : index
    %c0_3 = arith.constant 0 : index
    %1 = vector.load %arg2[%c0_1, %c0_2, %c0_3] : memref<6x128x128xf32, #tpu.memory_space<vmem>>, vector<1x128x128xf32>
    %2 = vector.shape_cast %1 : vector<1x128x128xf32> to vector<128x128xf32>
    %cst = arith.constant dense<0.000000e+00> : vector<64x128xf32>
    %3 = tpu.matmul %0, %2, %cst {dimension_numbers = #tpu.dot_dimension_numbers<[1], [0], [0], [1], [0, 0, 1, 1], [], []>} : vector<64x128xf32>, vector<128x128xf32>, vector<64x128xf32> -> vector<64x128xf32>
    %c0_4 = arith.constant 0 : index
    %c0_5 = arith.constant 0 : index
    %c0_6 = arith.constant 0 : index
    %4 = vector.load %arg3[%c0_4, %c0_5, %c0_6] : memref<6x1x128xf32, #tpu.memory_space<vmem>>, vector<1x1x128xf32>
    %5 = vector.shape_cast %4 : vector<1x1x128xf32> to vector<1x128xf32>
    %6 = vector.broadcast %5 : vector<1x128xf32> to vector<64x128xf32>
    %7 = arith.addf %3, %6 : vector<64x128xf32>
    %cst_7 = arith.constant 0.000000e+00 : f32
    %8 = vector.broadcast %cst_7 : f32 to vector<64x128xf32>
    %9 = arith.maximumf %7, %8 : vector<64x128xf32>
    %c1 = arith.constant 1 : index
    %c0_8 = arith.constant 0 : index
    %c0_9 = arith.constant 0 : index
    %10 = vector.load %arg2[%c1, %c0_8, %c0_9] : memref<6x128x128xf32, #tpu.memory_space<vmem>>, vector<1x128x128xf32>
    %11 = vector.shape_cast %10 : vector<1x128x128xf32> to vector<128x128xf32>
    %cst_10 = arith.constant dense<0.000000e+00> : vector<64x128xf32>
    %12 = tpu.matmul %9, %11, %cst_10 {dimension_numbers = #tpu.dot_dimension_numbers<[1], [0], [0], [1], [0, 0, 1, 1], [], []>} : vector<64x128xf32>, vector<128x128xf32>, vector<64x128xf32> -> vector<64x128xf32>
    %c1_11 = arith.constant 1 : index
    %c0_12 = arith.constant 0 : index
    %c0_13 = arith.constant 0 : index
    %13 = vector.load %arg3[%c1_11, %c0_12, %c0_13] : memref<6x1x128xf32, #tpu.memory_space<vmem>>, vector<1x1x128xf32>
    %14 = vector.shape_cast %13 : vector<1x1x128xf32> to vector<1x128xf32>
    %15 = vector.broadcast %14 : vector<1x128xf32> to vector<64x128xf32>
    %16 = arith.addf %12, %15 : vector<64x128xf32>
    %cst_14 = arith.constant 0.000000e+00 : f32
    %17 = vector.broadcast %cst_14 : f32 to vector<64x128xf32>
    %18 = arith.maximumf %16, %17 : vector<64x128xf32>
    %c2 = arith.constant 2 : index
    %c0_15 = arith.constant 0 : index
    %c0_16 = arith.constant 0 : index
    %19 = vector.load %arg2[%c2, %c0_15, %c0_16] : memref<6x128x128xf32, #tpu.memory_space<vmem>>, vector<1x128x128xf32>
    %20 = vector.shape_cast %19 : vector<1x128x128xf32> to vector<128x128xf32>
    %cst_17 = arith.constant dense<0.000000e+00> : vector<64x128xf32>
    %21 = tpu.matmul %18, %20, %cst_17 {dimension_numbers = #tpu.dot_dimension_numbers<[1], [0], [0], [1], [0, 0, 1, 1], [], []>} : vector<64x128xf32>, vector<128x128xf32>, vector<64x128xf32> -> vector<64x128xf32>
    %c2_18 = arith.constant 2 : index
    %c0_19 = arith.constant 0 : index
    %c0_20 = arith.constant 0 : index
    %22 = vector.load %arg3[%c2_18, %c0_19, %c0_20] : memref<6x1x128xf32, #tpu.memory_space<vmem>>, vector<1x1x128xf32>
    %23 = vector.shape_cast %22 : vector<1x1x128xf32> to vector<1x128xf32>
    %24 = vector.broadcast %23 : vector<1x128xf32> to vector<64x128xf32>
    %25 = arith.addf %21, %24 : vector<64x128xf32>
    %c3 = arith.constant 3 : index
    %c0_21 = arith.constant 0 : index
    %c0_22 = arith.constant 0 : index
    %26 = vector.load %arg2[%c3, %c0_21, %c0_22] : memref<6x128x128xf32, #tpu.memory_space<vmem>>, vector<1x128x128xf32>
    %27 = vector.shape_cast %26 : vector<1x128x128xf32> to vector<128x128xf32>
    %cst_23 = arith.constant dense<0.000000e+00> : vector<64x128xf32>
    %28 = tpu.matmul %25, %27, %cst_23 {dimension_numbers = #tpu.dot_dimension_numbers<[1], [0], [0], [1], [0, 0, 1, 1], [], []>} : vector<64x128xf32>, vector<128x128xf32>, vector<64x128xf32> -> vector<64x128xf32>
    %c3_24 = arith.constant 3 : index
    %c0_25 = arith.constant 0 : index
    %c0_26 = arith.constant 0 : index
    %29 = vector.load %arg3[%c3_24, %c0_25, %c0_26] : memref<6x1x128xf32, #tpu.memory_space<vmem>>, vector<1x1x128xf32>
    %30 = vector.shape_cast %29 : vector<1x1x128xf32> to vector<1x128xf32>
    %31 = vector.broadcast %30 : vector<1x128xf32> to vector<64x128xf32>
    %32 = arith.addf %28, %31 : vector<64x128xf32>
    %cst_27 = arith.constant 0.000000e+00 : f32
    %33 = vector.broadcast %cst_27 : f32 to vector<64x128xf32>
    %34 = arith.maximumf %32, %33 : vector<64x128xf32>
    %c4 = arith.constant 4 : index
    %c0_28 = arith.constant 0 : index
    %c0_29 = arith.constant 0 : index
    %35 = vector.load %arg2[%c4, %c0_28, %c0_29] : memref<6x128x128xf32, #tpu.memory_space<vmem>>, vector<1x128x128xf32>
    %36 = vector.shape_cast %35 : vector<1x128x128xf32> to vector<128x128xf32>
    %cst_30 = arith.constant dense<0.000000e+00> : vector<64x128xf32>
    %37 = tpu.matmul %34, %36, %cst_30 {dimension_numbers = #tpu.dot_dimension_numbers<[1], [0], [0], [1], [0, 0, 1, 1], [], []>} : vector<64x128xf32>, vector<128x128xf32>, vector<64x128xf32> -> vector<64x128xf32>
    %c4_31 = arith.constant 4 : index
    %c0_32 = arith.constant 0 : index
    %c0_33 = arith.constant 0 : index
    %38 = vector.load %arg3[%c4_31, %c0_32, %c0_33] : memref<6x1x128xf32, #tpu.memory_space<vmem>>, vector<1x1x128xf32>
    %39 = vector.shape_cast %38 : vector<1x1x128xf32> to vector<1x128xf32>
    %40 = vector.broadcast %39 : vector<1x128xf32> to vector<64x128xf32>
    %41 = arith.addf %37, %40 : vector<64x128xf32>
    %cst_34 = arith.constant 0.000000e+00 : f32
    %42 = vector.broadcast %cst_34 : f32 to vector<64x128xf32>
    %43 = arith.maximumf %41, %42 : vector<64x128xf32>
    %c5 = arith.constant 5 : index
    %c0_35 = arith.constant 0 : index
    %c0_36 = arith.constant 0 : index
    %44 = vector.load %arg2[%c5, %c0_35, %c0_36] : memref<6x128x128xf32, #tpu.memory_space<vmem>>, vector<1x128x128xf32>
    %45 = vector.shape_cast %44 : vector<1x128x128xf32> to vector<128x128xf32>
    %cst_37 = arith.constant dense<0.000000e+00> : vector<64x128xf32>
    %46 = tpu.matmul %43, %45, %cst_37 {dimension_numbers = #tpu.dot_dimension_numbers<[1], [0], [0], [1], [0, 0, 1, 1], [], []>} : vector<64x128xf32>, vector<128x128xf32>, vector<64x128xf32> -> vector<64x128xf32>
    %c5_38 = arith.constant 5 : index
    %c0_39 = arith.constant 0 : index
    %c0_40 = arith.constant 0 : index
    %47 = vector.load %arg3[%c5_38, %c0_39, %c0_40] : memref<6x1x128xf32, #tpu.memory_space<vmem>>, vector<1x1x128xf32>
    %48 = vector.shape_cast %47 : vector<1x1x128xf32> to vector<1x128xf32>
    %49 = vector.broadcast %48 : vector<1x128xf32> to vector<64x128xf32>
    %50 = arith.addf %46, %49 : vector<64x128xf32>
    %51 = math.tanh %50 : vector<64x128xf32>
    %c0_41 = arith.constant 0 : index
    %c0_42 = arith.constant 0 : index
    %52 = vector.load %arg4[%c0_41, %c0_42] : memref<64x128xf32, #tpu.memory_space<vmem>>, vector<64x128xf32>
    tpu.vector_store %arg4[%c0_41, %c0_42], %51 {strides = array<i32>} : memref<64x128xf32, #tpu.memory_space<vmem>>, vector<64x128xf32>,
    return
  }
  func.func @transform_0(%arg0: i32) -> (i32, i32) {
    %c0_i32 = arith.constant 0 : i32
    %c0_i32_0 = arith.constant 0 : i32
    return %arg0, %c0_i32 : i32, i32
  }
  func.func @transform_1(%arg0: i32) -> (i32, i32, i32) {
    %c0_i32 = arith.constant 0 : i32
    %c0_i32_0 = arith.constant 0 : i32
    %c0_i32_1 = arith.constant 0 : i32
    %c0_i32_2 = arith.constant 0 : i32
    return %c0_i32, %c0_i32_0, %c0_i32_1 : i32, i32, i32
  }
  func.func @transform_2(%arg0: i32) -> (i32, i32, i32) {
    %c0_i32 = arith.constant 0 : i32
    %c0_i32_0 = arith.constant 0 : i32
    %c0_i32_1 = arith.constant 0 : i32
    %c0_i32_2 = arith.constant 0 : i32
    return %c0_i32, %c0_i32_0, %c0_i32_1 : i32, i32, i32
  }
  func.func @transform_3(%arg0: i32) -> (i32, i32) {
    %c0_i32 = arith.constant 0 : i32
    %c0_i32_0 = arith.constant 0 : i32
    return %arg0, %c0_i32 : i32, i32
  }
}

</mosaic_0001>

<bundles_post_ra>
// kernel: tpu_custom_call.1
= control target key start
LH: loop header
LB: loop body
LE: loop exit
PB: predicated region body
PF: predicated region fallthrough
CT: control target
= control target key end

     0   :  { %8 = vsyncpa [#allocation3], 0  ;;  %s727_s0 = inlined_call_operand.hbm [shape: f32[64,128], index: 0, kind: input, shape index: {}]   ;;  %s728_s1 = inlined_call_operand.hbm [shape: f32[6,128,128], index: 1, kind: input, shape index: {}]   ;;  %s729_s2 = inlined_call_operand.hbm [shape: f32[6,1,128], index: 2, kind: input, shape index: {}]   ;;  %s730_s3 = inlined_call_operand.hbm [shape: f32[64,128], index: 3, kind: output, shape index: {}]  }
   0x1   :  { %9 = vsyncpa [#allocation6], 0 }
   0x2   :  { %10 = vsyncpa [#allocation4], 0  ;;  %s28_s14 = sshll.u32 %s728_s1, 4  ;;  %s678_s15 = smov [#allocation5]   ;;  %s29_s14 = int_to_ptr.hbm [resolvable:$true] %s28_s14 }
   0x3   :  { %s30_s16 = sshll.u32 %s678_s15, 4  ;;  %s15_s19 = sshll.u32 %s727_s0, 4  ;;  %s31_s16 = int_to_ptr.vmem [resolvable:$true] %s30_s16  ;;  %s16_s19 = int_to_ptr.hbm [resolvable:$true] %s15_s19 }
   0x4   :  { %s679_s20 = smov 128   ;;  %s680_s21 = smov 8  }
   0x5   :  { %36 = dma.hbm_to_vmem [thread:$0]  %s29_s14, 12288, %s31_s16, [#allocation6], %s679_s20, %s679_s20, %s680_s21  }
   0x6   :  { %s681_s22 = smov [#allocation2]   ;;  %s41_s1 = sshll.u32 %s729_s2, 4  ;;  %s42_s1 = int_to_ptr.hbm [resolvable:$true] %s41_s1 }
   0x7   :  { %s17_s23 = sshll.u32 %s681_s22, 4  ;;  %s682_s0 = smov [#allocation7]   ;;  %s18_s23 = int_to_ptr.vmem [resolvable:$true] %s17_s23 }
   0x8   :  { %23 = dma.hbm_to_vmem [thread:$0]  %s16_s19, 1024, %s18_s23, [#allocation3], %s679_s20, %s679_s20, %s680_s21  }
   0x9   :  { %s43_s26 = sshll.u32 %s682_s0, 4  ;;  %s683_s27 = smov 16   ;;  %s44_s26 = int_to_ptr.vmem [resolvable:$true] %s43_s26 }
   0xa   :  { %s684_s28 = smov 1  }
   0xb   :  { %49 = dma.hbm_to_vmem [thread:$0]  %s42_s1, 96, %s44_s26, [#allocation6], %s683_s27, %s683_s27, %s684_s28  }
   0xc   :  { %672 = dma.done.wait [#allocation3], 1024  }
   0xd   :  { %673 = vsyncadd [#allocation3], 4294966272 }
   0xe   :  { %674 = dma.done.wait [#allocation6], 12384  }
   0xf   :  { %675 = vsyncadd [#allocation6], 4294954912  ;;  %v85_v0 = vld [vmem:[#allocation5 + $0x78] sm:$0xff]  ;;  %v84_v1 = vld [vmem:[#allocation5 + $0x70] sm:$0xff]  ;;  %s685_s2 = smov [#allocation8]   ;;  %s500_s5 = sshll.u32 %s730_s3, 4  ;;  %s501_s5 = int_to_ptr.hbm [resolvable:$true] %s500_s5 }
  0x10   :  { %90 = vmatpush.msra.mxu0 %v85_v0  ;;  %514 = vmatpush.msra.mxu2 %v85_v0  ;;  %v83_v2 = vld [vmem:[#allocation5 + $0x68] sm:$0xff]  ;;  %v82_v3 = vld [vmem:[#allocation5 + $0x60] sm:$0xff]  ;;  %v81_v4 = vld [vmem:[#allocation5 + $0x58] sm:$0xff]  ;;  %s498_s29 = sshll.u32 %s685_s2, 4  ;;  %s499_s29 = int_to_ptr.vmem [resolvable:$true] %s498_s29 }
  0x11   :  { %v80_v5 = vld [vmem:[#allocation5 + $0x50] sm:$0xff]  ;;  %v79_v6 = vld [vmem:[#allocation5 + $0x48] sm:$0xff]  ;;  %v78_v7 = vld [vmem:[#allocation5 + $0x40] sm:$0xff] }
  0x12   :  { %91 = vmatpush.msra.mxu0 %v84_v1  ;;  %515 = vmatpush.msra.mxu2 %v84_v1  ;;  %v77_v8 = vld [vmem:[#allocation5 + $0x38] sm:$0xff]  ;;  %v76_v9 = vld [vmem:[#allocation5 + $0x30] sm:$0xff]  ;;  %v75_v10 = vld [vmem:[#allocation5 + $0x28] sm:$0xff] }
  0x13   :  { %v74_v11 = vld [vmem:[#allocation5 + $0x20] sm:$0xff]  ;;  %v73_v12 = vld [vmem:[#allocation5 + $0x18] sm:$0xff]  ;;  %v72_v13 = vld [vmem:[#allocation5 + $0x10] sm:$0xff] }
  0x14   :  { %92 = vmatpush.msra.mxu0 %v83_v2  ;;  %516 = vmatpush.msra.mxu2 %v83_v2  ;;  %v155_v14 = vld [vmem:[#allocation5 + $0xf8] sm:$0xff]  ;;  %v154_v15 = vld [vmem:[#allocation5 + $0xf0] sm:$0xff]  ;;  %v71_v16 = vld [vmem:[#allocation5 + $0x8] sm:$0xff] }
  0x15   :  { %161 = vmatpush.msra.mxu1 %v155_v14  ;;  %530 = vmatpush.msra.mxu3 %v155_v14  ;;  %v153_v17 = vld [vmem:[#allocation5 + $0xe8] sm:$0xff]  ;;  %v70_v18 = vld [vmem:[#allocation5] sm:$0xff]  ;;  %v151_v22 = vld [vmem:[#allocation5 + $0xd8] sm:$0xff] }
  0x16   :  { %93 = vmatpush.msra.mxu0 %v82_v3  ;;  %517 = vmatpush.msra.mxu2 %v82_v3  ;;  %v62_v19 = vld [vmem:[#allocation2] sm:$0xff]  ;;  %v150_v23 = vld [vmem:[#allocation5 + $0xd0] sm:$0xff]  ;;  %v149_v24 = vld [vmem:[#allocation5 + $0xc8] sm:$0xff] }
  0x17   :  { %162 = vmatpush.msra.mxu1 %v154_v15  ;;  %531 = vmatpush.msra.mxu3 %v154_v15  ;;  %v66_v20 = vld [vmem:[#allocation2 + $0x20] sm:$0xff]  ;;  %v63_v25 = vld [vmem:[#allocation2 + $0x8] sm:$0xff]  ;;  %v147_v28 = vld [vmem:[#allocation5 + $0xb8] sm:$0xff] }
  0x18   :  { %94 = vmatpush.msra.mxu0 %v81_v4  ;;  %518 = vmatpush.msra.mxu2 %v81_v4  ;;  %v152_v21 = vld [vmem:[#allocation5 + $0xe0] sm:$0xff]  ;;  %v67_v26 = vld [vmem:[#allocation2 + $0x28] sm:$0xff]  ;;  %v146_v29 = vld [vmem:[#allocation5 + $0xb0] sm:$0xff] }
  0x19   :  { %163 = vmatpush.msra.mxu1 %v153_v17  ;;  %532 = vmatpush.msra.mxu3 %v153_v17  ;;  %v148_v27 = vld [vmem:[#allocation5 + $0xc0] sm:$0xff]  ;;  %v145_v30 = vld [vmem:[#allocation5 + $0xa8] sm:$0xff]  ;;  %v64_v31 = vld [vmem:[#allocation2 + $0x10] sm:$0xff] }
  0x1a   :  { %95 = vmatpush.msra.mxu0 %v80_v5  ;;  %519 = vmatpush.msra.mxu2 %v80_v5  ;;  %v68_v32 = vld [vmem:[#allocation2 + $0x30] sm:$0xff]  ;;  %v144_v33 = vld [vmem:[#allocation5 + $0xa0] sm:$0xff]  ;;  %v143_v34 = vld [vmem:[#allocation5 + $0x98] sm:$0xff] }
  0x1b   :  { %164 = vmatpush.msra.mxu1 %v152_v21  ;;  %533 = vmatpush.msra.mxu3 %v152_v21  ;;  %v65_v35 = vld [vmem:[#allocation2 + $0x18] sm:$0xff]  ;;  %v142_v37 = vld [vmem:[#allocation5 + $0x90] sm:$0xff]  ;;  %v141_v38 = vld [vmem:[#allocation5 + $0x88] sm:$0xff] }
  0x1c   :  { %96 = vmatpush.msra.mxu0 %v79_v6  ;;  %520 = vmatpush.msra.mxu2 %v79_v6  ;;  %v69_v36 = vld [vmem:[#allocation2 + $0x38] sm:$0xff]  ;;  %v140_v39 = vld [vmem:[#allocation5 + $0x80] sm:$0xff]  ;;  %v225_v45 = vld [vmem:[#allocation5 + $0x170] sm:$0xff] }
  0x1d   :  { %165 = vmatpush.msra.mxu1 %v151_v22  ;;  %534 = vmatpush.msra.mxu3 %v151_v22  ;;  %v554_v40 = vld [vmem:[#allocation7] ss:$0 sm:$0xff]  ;;  %v226_v44 = vld [vmem:[#allocation5 + $0x178] sm:$0xff]  ;;  %v224_v46 = vld [vmem:[#allocation5 + $0x168] sm:$0xff] }
  0x1e   :  { %97 = vmatpush.msra.mxu0 %v78_v7  ;;  %521 = vmatpush.msra.mxu2 %v78_v7  ;;  %v223_v49 = vld [vmem:[#allocation5 + $0x160] sm:$0xff]  ;;  %v222_v53 = vld [vmem:[#allocation5 + $0x158] sm:$0xff]  ;;  %v221_v55 = vld [vmem:[#allocation5 + $0x150] sm:$0xff] }
  0x1f   :  { %166 = vmatpush.msra.mxu1 %v150_v23  ;;  %535 = vmatpush.msra.mxu3 %v150_v23  ;;  %v220_v56 = vld [vmem:[#allocation5 + $0x148] sm:$0xff]  ;;  %v219_v59 = vld [vmem:[#allocation5 + $0x140] sm:$0xff]  ;;  %v218_v63 = vld [vmem:[#allocation5 + $0x138] sm:$0xff] }
  0x20   :  { %98 = vmatpush.msra.mxu0 %v77_v8  ;;  %522 = vmatpush.msra.mxu2 %v77_v8  ;;  %v217_v1 = vld [vmem:[#allocation5 + $0x130] sm:$0xff]  ;;  %v216_v2 = vld [vmem:[#allocation5 + $0x128] sm:$0xff]  ;;  %v215_v5 = vld [vmem:[#allocation5 + $0x120] sm:$0xff] }
  0x21   :  { %167 = vmatpush.msra.mxu1 %v149_v24  ;;  %536 = vmatpush.msra.mxu3 %v149_v24  ;;  %v212_v15 = vld [vmem:[#allocation5 + $0x108] sm:$0xff]  ;;  %v555_v17 = vld [vmem:[#allocation7 + $0x1] ss:$0 sm:$0xff] }
  0x22   :  { %99 = vmatpush.msra.mxu0 %v76_v9  ;;  %523 = vmatpush.msra.mxu2 %v76_v9  ;;  %v214_v9 = vld [vmem:[#allocation5 + $0x118] sm:$0xff] }
  0x23   :  { %168 = vmatpush.msra.mxu1 %v148_v27  ;;  %537 = vmatpush.msra.mxu3 %v148_v27 }
  0x24   :  { %100 = vmatpush.msra.mxu0 %v75_v10  ;;  %524 = vmatpush.msra.mxu2 %v75_v10 }
  0x25   :  { %169 = vmatpush.msra.mxu1 %v147_v28  ;;  %538 = vmatpush.msra.mxu3 %v147_v28 }
  0x26   :  { %101 = vmatpush.msra.mxu0 %v74_v11  ;;  %525 = vmatpush.msra.mxu2 %v74_v11  ;;  %v213_v11 = vld [vmem:[#allocation5 + $0x110] sm:$0xff] }
  0x27   :  { %170 = vmatpush.msra.mxu1 %v146_v29  ;;  %539 = vmatpush.msra.mxu3 %v146_v29 }
  0x28   :  { %102 = vmatpush.msra.mxu0 %v73_v12  ;;  %526 = vmatpush.msra.mxu2 %v73_v12 }
  0x29   :  { %171 = vmatpush.msra.mxu1 %v145_v30  ;;  %540 = vmatpush.msra.mxu3 %v145_v30 }
  0x2a   :  { %103 = vmatpush.msra.mxu0 %v72_v13  ;;  %527 = vmatpush.msra.mxu2 %v72_v13 }
  0x2b   :  { %172 = vmatpush.msra.mxu1 %v144_v33  ;;  %541 = vmatpush.msra.mxu3 %v144_v33  ;;  %v288_v33 = vld [vmem:[#allocation5 + $0x1f0] sm:$0xff] }
  0x2c   :  { %104 = vmatpush.msra.mxu0 %v71_v16  ;;  %528 = vmatpush.msra.mxu2 %v71_v16  ;;  %v211_v16 = vld [vmem:[#allocation5 + $0x100] sm:$0xff] }
  0x2d   :  { %173 = vmatpush.msra.mxu1 %v143_v34  ;;  %542 = vmatpush.msra.mxu3 %v143_v34 }
  0x2e   :  { %105 = vmatpush.msra.mxu0 %v70_v18  ;;  %529 = vmatpush.msra.mxu2 %v70_v18 }
  0x2f   :  { %106 = vmatmul.f32.vlgmr.msra.gmra.mxu0 %v62_v19  ;;  %118 = vmatmul.f32.vlgmr.msra.gmra.mxu2 %v66_v20 }
  0x30   :  { %174 = vmatpush.msra.mxu1 %v142_v37  ;;  %543 = vmatpush.msra.mxu3 %v142_v37  ;;  %v286_v37 = vld [vmem:[#allocation5 + $0x1e0] sm:$0xff] }
  0x31   :  { %232 = vmatpush.msrb.mxu2 %v226_v44  ;;  %v282_v44 = vld [vmem:[#allocation5 + $0x1c0] sm:$0xff] }
  0x32   :  { %175 = vmatpush.msra.mxu1 %v141_v38  ;;  %544 = vmatpush.msra.mxu3 %v141_v38  ;;  %v285_v38 = vld [vmem:[#allocation5 + $0x1d8] sm:$0xff] }
  0x33   :  { %233 = vmatpush.msrb.mxu2 %v225_v45  ;;  %v281_v45 = vld [vmem:[#allocation5 + $0x1b8] sm:$0xff] }
  0x34   :  { %176 = vmatpush.msra.mxu1 %v140_v39  ;;  %545 = vmatpush.msra.mxu3 %v140_v39 }
  0x35   :  { %234 = vmatpush.msrb.mxu2 %v224_v46 }
  0x37   :  { %109 = vmatmul.f32.gmra.mxu0 %v63_v25  ;;  %121 = vmatmul.f32.gmra.mxu2 %v67_v26 }
  0x38   :  { %235 = vmatpush.msrb.mxu2 %v223_v49 }
  0x3a   :  { %236 = vmatpush.msrb.mxu2 %v222_v53 }
  0x3c   :  { %237 = vmatpush.msrb.mxu2 %v221_v55  ;;  %v275_v55 = vld [vmem:[#allocation5 + $0x188] sm:$0xff] }
  0x3e   :  { %238 = vmatpush.msrb.mxu2 %v220_v56 }
  0x3f   :  { %112 = vmatmul.f32.gmra.mxu0 %v64_v31  ;;  %124 = vmatmul.f32.gmra.mxu2 %v68_v32  ;;  %v289_v32 = vld [vmem:[#allocation5 + $0x1f8] sm:$0xff] }
  0x40   :  { %239 = vmatpush.msrb.mxu2 %v219_v59  ;;  %295 = vmatpush.msrb.mxu3 %v289_v32 }
  0x42   :  { %240 = vmatpush.msrb.mxu2 %v218_v63  ;;  %296 = vmatpush.msrb.mxu3 %v288_v33 }
  0x44   :  { %241 = vmatpush.msrb.mxu2 %v217_v1 }
  0x46   :  { %242 = vmatpush.msrb.mxu2 %v216_v2 }
  0x47   :  { %115 = vmatmul.f32.gmra.mxu0 %v65_v35  ;;  %127 = vmatmul.f32.gmra.mxu2 %v69_v36  ;;  %v287_v35 = vld [vmem:[#allocation5 + $0x1e8] sm:$0xff] }
  0x48   :  { %243 = vmatpush.msrb.mxu2 %v215_v5  ;;  %297 = vmatpush.msrb.mxu3 %v287_v35  ;;  %v358_v5 = vld [vmem:[#allocation5 + $0x268] sm:$0xff] }
  0x4a   :  { %244 = vmatpush.msrb.mxu2 %v214_v9  ;;  %298 = vmatpush.msrb.mxu3 %v286_v37  ;;  %v356_v9 = vld [vmem:[#allocation5 + $0x258] sm:$0xff] }
  0x4c   :  { %245 = vmatpush.msrb.mxu2 %v213_v11  ;;  %299 = vmatpush.msrb.mxu3 %v285_v38  ;;  %v354_v11 = vld [vmem:[#allocation5 + $0x248] sm:$0xff] }
  0x4e   :  { %246 = vmatpush.msrb.mxu2 %v212_v15  ;;  %v352_v15 = vld [vmem:[#allocation5 + $0x238] sm:$0xff] }
  0x50   :  { %247 = vmatpush.msrb.mxu2 %v211_v16  ;;  %v351_v16 = vld [vmem:[#allocation5 + $0x230] sm:$0xff] }
  0xac   :  { %v107_v41 = vpop.f32.mrf.mxu0 }
  0xad   :  { %v108_v42 = vadd.f32 %v554_v40, %v107_v41  ;;  %v283_v41 = vld [vmem:[#allocation5 + $0x1c8] sm:$0xff] }
  0xaf   :  { %v131_v43 = vmax.f32 %v108_v42, 0.0 }
  0xb1   :  { %177 = vmatmul.f32.vlgmr.msra.gmra.mxu1 %v131_v43 }
  0xb2   :  { %v119_v47 = vpop.f32.mrf.mxu2 }
  0xb3   :  { %v120_v48 = vadd.f32 %v554_v40, %v119_v47  ;;  %v280_v47 = vld [vmem:[#allocation5 + $0x1b0] sm:$0xff] }
  0xb4   :  { %v110_v50 = vpop.f32.mrf.mxu0 }
  0xb5   :  { %v111_v51 = vadd.f32 %v554_v40, %v110_v50  ;;  %v135_v52 = vmax.f32 %v120_v48, 0.0  ;;  %v279_v48 = vld [vmem:[#allocation5 + $0x1a8] sm:$0xff]  ;;  %v278_v50 = vld [vmem:[#allocation5 + $0x1a0] sm:$0xff] }
  0xb7   :  { %v132_v54 = vmax.f32 %v111_v51, 0.0  ;;  %189 = vmatmul.f32.vlgmr.msra.gmra.mxu3 %v135_v52  ;;  %v277_v52 = vld [vmem:[#allocation5 + $0x198] sm:$0xff] }
  0xb9   :  { %180 = vmatmul.f32.gmra.mxu1 %v132_v54  ;;  %v276_v54 = vld [vmem:[#allocation5 + $0x190] sm:$0xff] }
  0xba   :  { %v122_v57 = vpop.f32.mrf.mxu2 }
  0xbb   :  { %v123_v58 = vadd.f32 %v554_v40, %v122_v57  ;;  %v274_v57 = vld [vmem:[#allocation5 + $0x180] sm:$0xff] }
  0xbc   :  { %v113_v60 = vpop.f32.mrf.mxu0 }
  0xbd   :  { %v114_v61 = vadd.f32 %v554_v40, %v113_v60  ;;  %v136_v62 = vmax.f32 %v123_v58, 0.0  ;;  %v556_v58 = vld [vmem:[#allocation7 + $0x2] ss:$0 sm:$0xff] }
  0xbf   :  { %v133_v0 = vmax.f32 %v114_v61, 0.0  ;;  %192 = vmatmul.f32.gmra.mxu3 %v136_v62 }
  0xc1   :  { %183 = vmatmul.f32.gmra.mxu1 %v133_v0 }
  0xc2   :  { %v125_v3 = vpop.f32.mrf.mxu2 }
  0xc3   :  { %v126_v4 = vadd.f32 %v554_v40, %v125_v3  ;;  %v360_v3 = vld [vmem:[#allocation5 + $0x278] sm:$0xff] }
  0xc4   :  { %v116_v6 = vpop.f32.mrf.mxu0  ;;  %366 = vmatpush.msrb.mxu0 %v360_v3  ;;  %v416_v3 = vld [vmem:[#allocation5 + $0x280] sm:$0xff] }
  0xc5   :  { %v117_v7 = vadd.f32 %v554_v40, %v116_v6  ;;  %v137_v8 = vmax.f32 %v126_v4, 0.0  ;;  %v359_v4 = vld [vmem:[#allocation5 + $0x270] sm:$0xff]  ;;  %v357_v6 = vld [vmem:[#allocation5 + $0x260] sm:$0xff] }
  0xc6   :  { %367 = vmatpush.msrb.mxu0 %v359_v4  ;;  %v558_v4 = vld [vmem:[#allocation7 + $0x4] ss:$0 sm:$0xff] }
  0xc7   :  { %v134_v10 = vmax.f32 %v117_v7, 0.0  ;;  %195 = vmatmul.f32.gmra.mxu3 %v137_v8 }
  0xc8   :  { %368 = vmatpush.msrb.mxu0 %v358_v5 }
  0xc9   :  { %186 = vmatmul.f32.gmra.mxu1 %v134_v10  ;;  %v355_v10 = vld [vmem:[#allocation5 + $0x250] sm:$0xff] }
  0xca   :  { %v128_v12 = vpop.f32.mrf.mxu2  ;;  %369 = vmatpush.msrb.mxu0 %v357_v6 }
  0xcb   :  { %v129_v13 = vadd.f32 %v554_v40, %v128_v12  ;;  %v284_v40 = vld [vmem:[#allocation5 + $0x1d0] sm:$0xff]  ;;  %v353_v12 = vld [vmem:[#allocation5 + $0x240] sm:$0xff] }
  0xcc   :  { %300 = vmatpush.msrb.mxu3 %v284_v40  ;;  %370 = vmatpush.msrb.mxu0 %v356_v9  ;;  %v431_v40 = vld [vmem:[#allocation5 + $0x2f8] sm:$0xff] }
  0xcd   :  { %v138_v14 = vmax.f32 %v129_v13, 0.0  ;;  %437 = vmatpush.msrb.mxu1 %v431_v40 }
  0xce   :  { %301 = vmatpush.msrb.mxu3 %v283_v41  ;;  %371 = vmatpush.msrb.mxu0 %v355_v10  ;;  %v430_v41 = vld [vmem:[#allocation5 + $0x2f0] sm:$0xff] }
  0xcf   :  { %198 = vmatmul.f32.gmra.mxu3 %v138_v14  ;;  %438 = vmatpush.msrb.mxu1 %v430_v41 }
  0xd0   :  { %302 = vmatpush.msrb.mxu3 %v282_v44  ;;  %372 = vmatpush.msrb.mxu0 %v354_v11 }
  0xd2   :  { %303 = vmatpush.msrb.mxu3 %v281_v45  ;;  %373 = vmatpush.msrb.mxu0 %v353_v12  ;;  %v428_v45 = vld [vmem:[#allocation5 + $0x2e0] sm:$0xff] }
  0xd4   :  { %304 = vmatpush.msrb.mxu3 %v280_v47  ;;  %374 = vmatpush.msrb.mxu0 %v352_v15  ;;  %v427_v47 = vld [vmem:[#allocation5 + $0x2d8] sm:$0xff] }
  0xd6   :  { %305 = vmatpush.msrb.mxu3 %v279_v48  ;;  %375 = vmatpush.msrb.mxu0 %v351_v16  ;;  %v426_v48 = vld [vmem:[#allocation5 + $0x2d0] sm:$0xff] }
  0xd8   :  { %306 = vmatpush.msrb.mxu3 %v278_v50 }
  0xda   :  { %307 = vmatpush.msrb.mxu3 %v277_v52  ;;  %v424_v52 = vld [vmem:[#allocation5 + $0x2c0] sm:$0xff] }
  0xdc   :  { %308 = vmatpush.msrb.mxu3 %v276_v54  ;;  %v423_v54 = vld [vmem:[#allocation5 + $0x2b8] sm:$0xff] }
  0xde   :  { %309 = vmatpush.msrb.mxu3 %v275_v55  ;;  %v422_v55 = vld [vmem:[#allocation5 + $0x2b0] sm:$0xff] }
  0xe0   :  { %310 = vmatpush.msrb.mxu3 %v274_v57 }
 0x12e   :  { %v178_v18 = vpop.f32.mrf.mxu1 }
 0x12f   :  { %v179_v19 = vadd.f32 %v555_v17, %v178_v18  ;;  %v349_v18 = vld [vmem:[#allocation5 + $0x220] sm:$0xff] }
 0x131   :  { %v202_v20 = vmax.f32 %v179_v19, 0.0 }
 0x133   :  { %248 = vmatmul.f32.vlgmr.msrb.gmra.mxu2 %v202_v20 }
 0x136   :  { %v181_v21 = vpop.f32.mrf.mxu1 }
 0x137   :  { %v182_v22 = vadd.f32 %v555_v17, %v181_v21  ;;  %v348_v21 = vld [vmem:[#allocation5 + $0x218] sm:$0xff] }
 0x139   :  { %v203_v23 = vmax.f32 %v182_v22, 0.0  ;;  %v347_v22 = vld [vmem:[#allocation5 + $0x210] sm:$0xff] }
 0x13a   :  { %v190_v27 = vpop.f32.mrf.mxu3 }
 0x13b   :  { %251 = vmatmul.f32.gmra.mxu2 %v203_v23  ;;  %v191_v31 = vadd.f32 %v555_v17, %v190_v27  ;;  %v557_v27 = vld [vmem:[#allocation7 + $0x3] ss:$0 sm:$0xff] }
 0x13d   :  { %v206_v36 = vmax.f32 %v191_v31, 0.0 }
 0x13e   :  { %v184_v24 = vpop.f32.mrf.mxu1 }
 0x13f   :  { %v185_v25 = vadd.f32 %v555_v17, %v184_v24 }
 0x141   :  { %v204_v26 = vmax.f32 %v185_v25, 0.0  ;;  %v346_v25 = vld [vmem:[#allocation5 + $0x208] sm:$0xff] }
 0x142   :  { %v193_v34 = vpop.f32.mrf.mxu3 }
 0x143   :  { %254 = vmatmul.f32.gmra.mxu2 %v204_v26  ;;  %v194_v39 = vadd.f32 %v555_v17, %v193_v34  ;;  %v345_v26 = vld [vmem:[#allocation5 + $0x200] sm:$0xff] }
 0x145   :  { %v207_v43 = vmax.f32 %v194_v39, 0.0 }
 0x146   :  { %v187_v28 = vpop.f32.mrf.mxu1 }
 0x147   :  { %v188_v29 = vadd.f32 %v555_v17, %v187_v28 }
 0x149   :  { %v205_v30 = vmax.f32 %v188_v29, 0.0 }
 0x14a   :  { %v196_v42 = vpop.f32.mrf.mxu3 }
 0x14b   :  { %257 = vmatmul.f32.gmra.mxu2 %v205_v30  ;;  %v197_v46 = vadd.f32 %v555_v17, %v196_v42  ;;  %v429_v42 = vld [vmem:[#allocation5 + $0x2e8] sm:$0xff] }
 0x14c   :  { %439 = vmatpush.msrb.mxu1 %v429_v42 }
 0x14d   :  { %v208_v49 = vmax.f32 %v197_v46, 0.0 }
 0x14e   :  { %440 = vmatpush.msrb.mxu1 %v428_v45 }
 0x150   :  { %441 = vmatpush.msrb.mxu1 %v427_v47 }
 0x152   :  { %v199_v51 = vpop.f32.mrf.mxu3  ;;  %442 = vmatpush.msrb.mxu1 %v426_v48 }
 0x153   :  { %260 = vmatmul.f32.gmra.mxu2 %v206_v36  ;;  %v200_v53 = vadd.f32 %v555_v17, %v199_v51  ;;  %v350_v17 = vld [vmem:[#allocation5 + $0x228] sm:$0xff] }
 0x154   :  { %376 = vmatpush.msrb.mxu0 %v350_v17 }
 0x155   :  { %v209_v56 = vmax.f32 %v200_v53, 0.0 }
 0x156   :  { %377 = vmatpush.msrb.mxu0 %v349_v18 }
 0x158   :  { %378 = vmatpush.msrb.mxu0 %v348_v21 }
 0x15a   :  { %379 = vmatpush.msrb.mxu0 %v347_v22 }
 0x15b   :  { %263 = vmatmul.f32.gmra.mxu2 %v207_v43 }
 0x15c   :  { %380 = vmatpush.msrb.mxu0 %v346_v25 }
 0x15e   :  { %381 = vmatpush.msrb.mxu0 %v345_v26 }
 0x163   :  { %266 = vmatmul.f32.gmra.mxu2 %v208_v49  ;;  %v425_v49 = vld [vmem:[#allocation5 + $0x2c8] sm:$0xff] }
 0x164   :  { %443 = vmatpush.msrb.mxu1 %v425_v49 }
 0x166   :  { %444 = vmatpush.msrb.mxu1 %v424_v52 }
 0x168   :  { %445 = vmatpush.msrb.mxu1 %v423_v54 }
 0x16a   :  { %446 = vmatpush.msrb.mxu1 %v422_v55 }
 0x16b   :  { %269 = vmatmul.f32.gmra.mxu2 %v209_v56  ;;  %v421_v56 = vld [vmem:[#allocation5 + $0x2a8] sm:$0xff] }
 0x16c   :  { %447 = vmatpush.msrb.mxu1 %v421_v56 }
 0x1b6   :  { %v249_v59 = vpop.f32.mrf.mxu2 }
 0x1b7   :  { %v250_v60 = vadd.f32 %v556_v58, %v249_v59  ;;  %v420_v59 = vld [vmem:[#allocation5 + $0x2a0] sm:$0xff] }
 0x1b8   :  { %448 = vmatpush.msrb.mxu1 %v420_v59 }
 0x1b9   :  { %311 = vmatmul.f32.vlgmr.msrb.gmra.mxu3 %v250_v60 }
 0x1be   :  { %v252_v61 = vpop.f32.mrf.mxu2 }
 0x1bf   :  { %v253_v62 = vadd.f32 %v556_v58, %v252_v61  ;;  %v419_v61 = vld [vmem:[#allocation5 + $0x298] sm:$0xff] }
 0x1c0   :  { %449 = vmatpush.msrb.mxu1 %v419_v61 }
 0x1c1   :  { %314 = vmatmul.f32.gmra.mxu3 %v253_v62  ;;  %v418_v62 = vld [vmem:[#allocation5 + $0x290] sm:$0xff] }
 0x1c2   :  { %450 = vmatpush.msrb.mxu1 %v418_v62 }
 0x1c6   :  { %v255_v63 = vpop.f32.mrf.mxu2 }
 0x1c7   :  { %v256_v0 = vadd.f32 %v556_v58, %v255_v63 }
 0x1c9   :  { %317 = vmatmul.f32.gmra.mxu3 %v256_v0 }
 0x1ce   :  { %v258_v1 = vpop.f32.mrf.mxu2 }
 0x1cf   :  { %v259_v2 = vadd.f32 %v556_v58, %v258_v1 }
 0x1d1   :  { %320 = vmatmul.f32.gmra.mxu3 %v259_v2  ;;  %v417_v2 = vld [vmem:[#allocation5 + $0x288] sm:$0xff] }
 0x1d2   :  { %451 = vmatpush.msrb.mxu1 %v417_v2 }
 0x1d4   :  { %452 = vmatpush.msrb.mxu1 %v416_v3 }
 0x1d6   :  { %v261_v7 = vpop.f32.mrf.mxu2 }
 0x1d7   :  { %v262_v8 = vadd.f32 %v556_v58, %v261_v7 }
 0x1d9   :  { %323 = vmatmul.f32.gmra.mxu3 %v262_v8 }
 0x1de   :  { %v264_v13 = vpop.f32.mrf.mxu2 }
 0x1df   :  { %v265_v14 = vadd.f32 %v556_v58, %v264_v13 }
 0x1e1   :  { %326 = vmatmul.f32.gmra.mxu3 %v265_v14 }
 0x1e6   :  { %v267_v19 = vpop.f32.mrf.mxu2 }
 0x1e7   :  { %v268_v20 = vadd.f32 %v556_v58, %v267_v19 }
 0x1e9   :  { %329 = vmatmul.f32.gmra.mxu3 %v268_v20 }
 0x1ee   :  { %v270_v23 = vpop.f32.mrf.mxu2 }
 0x1ef   :  { %v271_v24 = vadd.f32 %v556_v58, %v270_v23 }
 0x1f1   :  { %332 = vmatmul.f32.gmra.mxu3 %v271_v24 }
 0x23c   :  { %v312_v28 = vpop.f32.mrf.mxu3 }
 0x23d   :  { %v313_v29 = vadd.f32 %v557_v27, %v312_v28 }
 0x23f   :  { %v336_v30 = vmax.f32 %v313_v29, 0.0  ;;  %v559_v29 = vld [vmem:[#allocation7 + $0x5] ss:$0 sm:$0xff] }
 0x241   :  { %382 = vmatmul.f32.vlgmr.msrb.gmra.mxu0 %v336_v30 }
 0x244   :  { %v315_v31 = vpop.f32.mrf.mxu3 }
 0x245   :  { %v316_v32 = vadd.f32 %v557_v27, %v315_v31 }
 0x247   :  { %v337_v33 = vmax.f32 %v316_v32, 0.0 }
 0x249   :  { %385 = vmatmul.f32.gmra.mxu0 %v337_v33 }
 0x24c   :  { %v318_v34 = vpop.f32.mrf.mxu3 }
 0x24d   :  { %v319_v35 = vadd.f32 %v557_v27, %v318_v34 }
 0x24f   :  { %v338_v36 = vmax.f32 %v319_v35, 0.0 }
 0x251   :  { %388 = vmatmul.f32.gmra.mxu0 %v338_v36 }
 0x254   :  { %v321_v37 = vpop.f32.mrf.mxu3 }
 0x255   :  { %v322_v38 = vadd.f32 %v557_v27, %v321_v37 }
 0x257   :  { %v339_v39 = vmax.f32 %v322_v38, 0.0 }
 0x259   :  { %391 = vmatmul.f32.gmra.mxu0 %v339_v39 }
 0x25c   :  { %v324_v43 = vpop.f32.mrf.mxu3 }
 0x25d   :  { %v325_v44 = vadd.f32 %v557_v27, %v324_v43 }
 0x25f   :  { %v340_v46 = vmax.f32 %v325_v44, 0.0 }
 0x261   :  { %394 = vmatmul.f32.gmra.mxu0 %v340_v46 }
 0x264   :  { %v327_v50 = vpop.f32.mrf.mxu3 }
 0x265   :  { %v328_v51 = vadd.f32 %v557_v27, %v327_v50 }
 0x267   :  { %v341_v53 = vmax.f32 %v328_v51, 0.0 }
 0x269   :  { %397 = vmatmul.f32.gmra.mxu0 %v341_v53 }
 0x26c   :  { %v330_v57 = vpop.f32.mrf.mxu3 }
 0x26d   :  { %v331_v58 = vadd.f32 %v557_v27, %v330_v57 }
 0x26f   :  { %v342_v60 = vmax.f32 %v331_v58, 0.0 }
 0x271   :  { %400 = vmatmul.f32.gmra.mxu0 %v342_v60 }
 0x274   :  { %v333_v63 = vpop.f32.mrf.mxu3 }
 0x275   :  { %v334_v0 = vadd.f32 %v557_v27, %v333_v63 }
 0x277   :  { %v343_v1 = vmax.f32 %v334_v0, 0.0 }
 0x279   :  { %403 = vmatmul.f32.gmra.mxu0 %v343_v1 }
 0x2be   :  { %v383_v5 = vpop.f32.mrf.mxu0 }
 0x2bf   :  { %v384_v6 = vadd.f32 %v558_v4, %v383_v5 }
 0x2c1   :  { %v407_v7 = vmax.f32 %v384_v6, 0.0 }
 0x2c3   :  { %453 = vmatmul.f32.vlgmr.msrb.gmra.mxu1 %v407_v7 }
 0x2c6   :  { %v386_v8 = vpop.f32.mrf.mxu0 }
 0x2c7   :  { %v387_v9 = vadd.f32 %v558_v4, %v386_v8 }
 0x2c9   :  { %v408_v10 = vmax.f32 %v387_v9, 0.0 }
 0x2cb   :  { %456 = vmatmul.f32.gmra.mxu1 %v408_v10 }
 0x2ce   :  { %v389_v11 = vpop.f32.mrf.mxu0 }
 0x2cf   :  { %v390_v12 = vadd.f32 %v558_v4, %v389_v11 }
 0x2d1   :  { %v409_v13 = vmax.f32 %v390_v12, 0.0 }
 0x2d3   :  { %459 = vmatmul.f32.gmra.mxu1 %v409_v13 }
 0x2d6   :  { %v392_v14 = vpop.f32.mrf.mxu0 }
 0x2d7   :  { %v393_v15 = vadd.f32 %v558_v4, %v392_v14 }
 0x2d9   :  { %v410_v16 = vmax.f32 %v393_v15, 0.0 }
 0x2db   :  { %462 = vmatmul.f32.gmra.mxu1 %v410_v16 }
 0x2de   :  { %v395_v17 = vpop.f32.mrf.mxu0 }
 0x2df   :  { %v396_v18 = vadd.f32 %v558_v4, %v395_v17 }
 0x2e1   :  { %v411_v19 = vmax.f32 %v396_v18, 0.0 }
 0x2e3   :  { %465 = vmatmul.f32.gmra.mxu1 %v411_v19 }
 0x2e6   :  { %v398_v20 = vpop.f32.mrf.mxu0 }
 0x2e7   :  { %v399_v21 = vadd.f32 %v558_v4, %v398_v20 }
 0x2e9   :  { %v412_v22 = vmax.f32 %v399_v21, 0.0 }
 0x2eb   :  { %468 = vmatmul.f32.gmra.mxu1 %v412_v22 }
 0x2ee   :  { %v401_v23 = vpop.f32.mrf.mxu0 }
 0x2ef   :  { %v402_v24 = vadd.f32 %v558_v4, %v401_v23 }
 0x2f1   :  { %v413_v25 = vmax.f32 %v402_v24, 0.0 }
 0x2f3   :  { %471 = vmatmul.f32.gmra.mxu1 %v413_v25 }
 0x2f6   :  { %v404_v26 = vpop.f32.mrf.mxu0 }
 0x2f7   :  { %v405_v27 = vadd.f32 %v558_v4, %v404_v26 }
 0x2f9   :  { %v414_v28 = vmax.f32 %v405_v27, 0.0 }
 0x2fb   :  { %474 = vmatmul.f32.gmra.mxu1 %v414_v28 }
 0x340   :  { %v454_v30 = vpop.f32.mrf.mxu1 }
 0x341   :  { %v455_v31 = vadd.f32 %v559_v29, %v454_v30 }
 0x343   :  { %560 = vtanh.f32 %v455_v31 }
 0x348   :  { %v457_v32 = vpop.f32.mrf.mxu1 }
 0x349   :  { %v561_v33 = vpop.eup %560  ;;  %v458_v34 = vadd.f32 %v559_v29, %v457_v32 }
 0x34a   :  { %486 = vst [vmem:[#allocation8] sm:$0xff] %v561_v33 }
 0x34b   :  { %562 = vtanh.f32 %v458_v34 }
 0x350   :  { %v460_v35 = vpop.f32.mrf.mxu1 }
 0x351   :  { %v563_v36 = vpop.eup %562  ;;  %v461_v37 = vadd.f32 %v559_v29, %v460_v35 }
 0x352   :  { %487 = vst [vmem:[#allocation8 + $0x8] sm:$0xff] %v563_v36 }
 0x353   :  { %564 = vtanh.f32 %v461_v37 }
 0x358   :  { %v463_v38 = vpop.f32.mrf.mxu1 }
 0x359   :  { %v565_v39 = vpop.eup %564  ;;  %v464_v40 = vadd.f32 %v559_v29, %v463_v38 }
 0x35a   :  { %488 = vst [vmem:[#allocation8 + $0x10] sm:$0xff] %v565_v39 }
 0x35b   :  { %566 = vtanh.f32 %v464_v40 }
 0x360   :  { %v466_v41 = vpop.f32.mrf.mxu1 }
 0x361   :  { %v567_v42 = vpop.eup %566  ;;  %v467_v43 = vadd.f32 %v559_v29, %v466_v41 }
 0x362   :  { %489 = vst [vmem:[#allocation8 + $0x18] sm:$0xff] %v567_v42 }
 0x363   :  { %568 = vtanh.f32 %v467_v43 }
 0x368   :  { %v469_v44 = vpop.f32.mrf.mxu1 }
 0x369   :  { %v569_v45 = vpop.eup %568  ;;  %v470_v46 = vadd.f32 %v559_v29, %v469_v44 }
 0x36a   :  { %490 = vst [vmem:[#allocation8 + $0x20] sm:$0xff] %v569_v45 }
 0x36b   :  { %570 = vtanh.f32 %v470_v46 }
 0x370   :  { %v472_v47 = vpop.f32.mrf.mxu1 }
 0x371   :  { %v571_v48 = vpop.eup %570  ;;  %v473_v49 = vadd.f32 %v559_v29, %v472_v47 }
 0x372   :  { %491 = vst [vmem:[#allocation8 + $0x28] sm:$0xff] %v571_v48 }
 0x373   :  { %572 = vtanh.f32 %v473_v49 }
 0x378   :  { %v475_v50 = vpop.f32.mrf.mxu1 }
 0x379   :  { %v573_v51 = vpop.eup %572  ;;  %v476_v52 = vadd.f32 %v559_v29, %v475_v50 }
 0x37a   :  { %492 = vst [vmem:[#allocation8 + $0x30] sm:$0xff] %v573_v51 }
 0x37b   :  { %574 = vtanh.f32 %v476_v52 }
 0x381   :  { %v575_v53 = vpop.eup %574 }
 0x382   :  { %493 = vst [vmem:[#allocation8 + $0x38] sm:$0xff] %v575_v53 }
 0x383   :  { %506 = dma.vmem_to_hbm [thread:$0]  %s499_s29, 1024, %s501_s5, [#allocation4], %s679_s20, %s679_s20, %s680_s21  }
 0x384   :  { %676 = dma.done.wait [#allocation4], 1024  }
 0x385   :  { %677 = vsyncadd [#allocation4], 4294966272 }
 0x386   :  { %511 = vsyncpa [#allocation3], 1 }
 0x387   :  { %512 = vsyncpa [#allocation6], 1 }
 0x388   :  { %513 = vsyncpa [#allocation4], 1 }

</bundles_post_ra>
